<compile_context>
chip_gen: v7x
topology: tpu7x:2x2x1
jax: 0.10.0
libtpu: 0.0.40
codegen_flags: <defaults>
</compile_context>

<pallas_src>
import functools

import jax
import jax.numpy as jnp
from jax.experimental import pallas as pl
from jax.experimental.pallas import tpu as pltpu

LANE = 128  # vreg lane width; pad feature dims to multiples of this.


def actor_mlp_kernel(x_ref, w1_ref, b1_ref, w2_ref, b2_ref, w3_ref, b3_ref, o_ref):
    """Fused forward for one batch tile: matmuls on the MXU (f32 accumulate),
    ReLU on the VPU, tanh on the EUP. Everything stays in VMEM."""
    x = x_ref[...]                                               # (TB, Sp)

    h1 = jnp.dot(x, w1_ref[...], preferred_element_type=jnp.float32)
    h1 = jnp.maximum(h1 + b1_ref[...], 0.0)                      # (TB, Hp)

    h2 = jnp.dot(h1, w2_ref[...], preferred_element_type=jnp.float32)
    h2 = jnp.maximum(h2 + b2_ref[...], 0.0)                      # (TB, Hp)

    h3 = jnp.dot(h2, w3_ref[...], preferred_element_type=jnp.float32)
    h3 = h3 + b3_ref[...]                                        # (TB, Op)

    o_ref[...] = jnp.tanh(h3).astype(o_ref.dtype)


def _round_up(x, m):
    return ((x + m - 1) // m) * m


def _pad2(a, rows, cols):
    return jnp.pad(a, ((0, rows - a.shape[0]), (0, cols - a.shape[1])))


@functools.partial(jax.jit, static_argnames=("block_b",))
def actor_forward(state, w1, b1, w2, b2, w3, b3, *, block_b=128):
    B, S = state.shape
    H = w1.shape[1]
    O = w3.shape[1]

    # Pad features to lane width and batch to the batch-tile size.
    Sp = _round_up(S, LANE)
    Hp = _round_up(H, LANE)
    Op = _round_up(O, LANE)
    Bp = _round_up(B, block_b)

    x_p = _pad2(state, Bp, Sp)
    w1_p, b1_p = _pad2(w1, Sp, Hp), _pad2(b1, 1, Hp)
    w2_p, b2_p = _pad2(w2, Hp, Hp), _pad2(b2, 1, Hp)
    w3_p, b3_p = _pad2(w3, Hp, Op), _pad2(b3, 1, Op)

    grid = (Bp // block_b,)

    # Weights/biases: constant index_map -> VMEM-resident across grid steps.
    resident = lambda shape: pl.BlockSpec(shape, lambda i: (0, 0))

    out_p = pl.pallas_call(
        actor_mlp_kernel,
        out_shape=jax.ShapeDtypeStruct((Bp, Op), state.dtype),
        grid=grid,
        in_specs=[
            pl.BlockSpec((block_b, Sp), lambda i: (i, 0)),   # activations: pipelined
            resident((Sp, Hp)), resident((1, Hp)),
            resident((Hp, Hp)), resident((1, Hp)),
            resident((Hp, Op)), resident((1, Op)),
        ],
        out_specs=pl.BlockSpec((block_b, Op), lambda i: (i, 0)),
        compiler_params=pltpu.CompilerParams(
            dimension_semantics=("parallel",),               # megacore sharding on v7x
        ),
    )(x_p, w1_p, b1_p, w2_p, b2_p, w3_p, b3_p)

    return out_p[:B, :O]


def init_params(key, state_dim, hidden_size, output_size, dtype=jnp.float32):
    """Mirror nn.Linear default init U(-1/sqrt(fan_in), +1/sqrt(fan_in)).
    Weights stored transposed vs PyTorch: (in_features, out_features)."""
    ks = jax.random.split(key, 6)

    def linear(kw, kb, fan_in, fan_out):
        bound = 1.0 / jnp.sqrt(jnp.float32(fan_in))
        w = jax.random.uniform(kw, (fan_in, fan_out), dtype, -bound, bound)
        b = jax.random.uniform(kb, (1, fan_out), dtype, -bound, bound)
        return w, b

    w1, b1 = linear(ks[0], ks[1], state_dim, hidden_size)
    w2, b2 = linear(ks[2], ks[3], hidden_size, hidden_size)
    w3, b3 = linear(ks[4], ks[5], hidden_size, output_size)
    return w1, b1, w2, b2, w3, b3


def reference_forward(state, w1, b1, w2, b2, w3, b3):
    """Pure-JAX reference matching the PyTorch forward (output_act = tanh)."""
    h = jax.nn.relu(state @ w1 + b1)
    h = jax.nn.relu(h @ w2 + b2)
    return jnp.tanh(h @ w3 + b3)


if __name__ == "__main__":
    # Module-consistent sizes: state_dim=16, hidden=32, output=8.
    # Batch of 256 amortizes per-call overhead and exercises the 2-step batch grid.
    B, STATE_DIM, HIDDEN, OUT = 256, 16, 32, 8

    key = jax.random.PRNGKey(0)
    k_params, k_state = jax.random.split(key)

    params = init_params(k_params, STATE_DIM, HIDDEN, OUT)
    state = jax.random.normal(k_state, (B, STATE_DIM), dtype=jnp.float32)

    out = actor_forward(state, *params)
    out = jax.block_until_ready(out)

    ref = reference_forward(state, *params)
    assert out.shape == (B, OUT), out.shape
    assert jnp.allclose(out, ref, atol=1e-5, rtol=1e-5), "mismatch vs reference"

    print("KERNEL_OK")
</pallas_src>

<mosaic_0001>
module attributes {stable_mosaic.version = 11 : i64} {
  func.func @actor_mlp_kernel(%arg0: i32, %arg1: memref<128x128xf32, #tpu.memory_space<vmem>>, %arg2: memref<128x128xf32, #tpu.memory_space<vmem>>, %arg3: memref<1x128xf32, #tpu.memory_space<vmem>>, %arg4: memref<128x128xf32, #tpu.memory_space<vmem>>, %arg5: memref<1x128xf32, #tpu.memory_space<vmem>>, %arg6: memref<128x128xf32, #tpu.memory_space<vmem>>, %arg7: memref<1x128xf32, #tpu.memory_space<vmem>>, %arg8: memref<128x128xf32, #tpu.memory_space<vmem>>) attributes {dimension_semantics = [#tpu.dimension_semantics<parallel>], iteration_bounds = array<i64: 2>, scalar_prefetch = 0 : i64, scratch_operands = 0 : i64, tpu.core_type = #tpu.core_type<tc>, window_params = [{transform_indices = @transform_0, window_bounds = array<i64: 128, 128>}, {pipeline_mode = #tpu.pipeline_mode<synchronous>, transform_indices = @transform_1, window_bounds = array<i64: 128, 128>}, {pipeline_mode = #tpu.pipeline_mode<synchronous>, transform_indices = @transform_2, window_bounds = array<i64: 1, 128>}, {pipeline_mode = #tpu.pipeline_mode<synchronous>, transform_indices = @transform_3, window_bounds = array<i64: 128, 128>}, {pipeline_mode = #tpu.pipeline_mode<synchronous>, transform_indices = @transform_4, window_bounds = array<i64: 1, 128>}, {pipeline_mode = #tpu.pipeline_mode<synchronous>, transform_indices = @transform_5, window_bounds = array<i64: 128, 128>}, {pipeline_mode = #tpu.pipeline_mode<synchronous>, transform_indices = @transform_6, window_bounds = array<i64: 1, 128>}, {transform_indices = @transform_7, window_bounds = array<i64: 128, 128>}]} {
    %c0 = arith.constant 0 : index
    %c0_0 = arith.constant 0 : index
    %0 = vector.load %arg1[%c0, %c0_0] : memref<128x128xf32, #tpu.memory_space<vmem>>, vector<128x128xf32>
    %c0_1 = arith.constant 0 : index
    %c0_2 = arith.constant 0 : index
    %1 = vector.load %arg2[%c0_1, %c0_2] : memref<128x128xf32, #tpu.memory_space<vmem>>, vector<128x128xf32>
    %cst = arith.constant dense<0.000000e+00> : vector<128x128xf32>
    %2 = tpu.matmul %0, %1, %cst {dimension_numbers = #tpu.dot_dimension_numbers<[1], [0], [0], [1], [0, 0, 1, 1], [], []>} : vector<128x128xf32>, vector<128x128xf32>, vector<128x128xf32> -> vector<128x128xf32>
    %c0_3 = arith.constant 0 : index
    %c0_4 = arith.constant 0 : index
    %3 = vector.load %arg3[%c0_3, %c0_4] : memref<1x128xf32, #tpu.memory_space<vmem>>, vector<1x128xf32>
    %4 = vector.broadcast %3 : vector<1x128xf32> to vector<128x128xf32>
    %5 = arith.addf %2, %4 : vector<128x128xf32>
    %cst_5 = arith.constant 0.000000e+00 : f32
    %6 = vector.broadcast %cst_5 : f32 to vector<128x128xf32>
    %7 = arith.maximumf %5, %6 : vector<128x128xf32>
    %c0_6 = arith.constant 0 : index
    %c0_7 = arith.constant 0 : index
    %8 = vector.load %arg4[%c0_6, %c0_7] : memref<128x128xf32, #tpu.memory_space<vmem>>, vector<128x128xf32>
    %cst_8 = arith.constant dense<0.000000e+00> : vector<128x128xf32>
    %9 = tpu.matmul %7, %8, %cst_8 {dimension_numbers = #tpu.dot_dimension_numbers<[1], [0], [0], [1], [0, 0, 1, 1], [], []>} : vector<128x128xf32>, vector<128x128xf32>, vector<128x128xf32> -> vector<128x128xf32>
    %c0_9 = arith.constant 0 : index
    %c0_10 = arith.constant 0 : index
    %10 = vector.load %arg5[%c0_9, %c0_10] : memref<1x128xf32, #tpu.memory_space<vmem>>, vector<1x128xf32>
    %11 = vector.broadcast %10 : vector<1x128xf32> to vector<128x128xf32>
    %12 = arith.addf %9, %11 : vector<128x128xf32>
    %cst_11 = arith.constant 0.000000e+00 : f32
    %13 = vector.broadcast %cst_11 : f32 to vector<128x128xf32>
    %14 = arith.maximumf %12, %13 : vector<128x128xf32>
    %c0_12 = arith.constant 0 : index
    %c0_13 = arith.constant 0 : index
    %15 = vector.load %arg6[%c0_12, %c0_13] : memref<128x128xf32, #tpu.memory_space<vmem>>, vector<128x128xf32>
    %cst_14 = arith.constant dense<0.000000e+00> : vector<128x128xf32>
    %16 = tpu.matmul %14, %15, %cst_14 {dimension_numbers = #tpu.dot_dimension_numbers<[1], [0], [0], [1], [0, 0, 1, 1], [], []>} : vector<128x128xf32>, vector<128x128xf32>, vector<128x128xf32> -> vector<128x128xf32>
    %c0_15 = arith.constant 0 : index
    %c0_16 = arith.constant 0 : index
    %17 = vector.load %arg7[%c0_15, %c0_16] : memref<1x128xf32, #tpu.memory_space<vmem>>, vector<1x128xf32>
    %18 = vector.broadcast %17 : vector<1x128xf32> to vector<128x128xf32>
    %19 = arith.addf %16, %18 : vector<128x128xf32>
    %20 = math.tanh %19 : vector<128x128xf32>
    %c0_17 = arith.constant 0 : index
    %c0_18 = arith.constant 0 : index
    %21 = vector.load %arg8[%c0_17, %c0_18] : memref<128x128xf32, #tpu.memory_space<vmem>>, vector<128x128xf32>
    tpu.vector_store %arg8[%c0_17, %c0_18], %20 {strides = array<i32>} : memref<128x128xf32, #tpu.memory_space<vmem>>, vector<128x128xf32>,
    return
  }
  func.func @transform_0(%arg0: i32) -> (i32, i32) {
    %c0_i32 = arith.constant 0 : i32
    %c0_i32_0 = arith.constant 0 : i32
    return %arg0, %c0_i32 : i32, i32
  }
  func.func @transform_1(%arg0: i32) -> (i32, i32) {
    %c0_i32 = arith.constant 0 : i32
    %c0_i32_0 = arith.constant 0 : i32
    %c0_i32_1 = arith.constant 0 : i32
    return %c0_i32, %c0_i32_0 : i32, i32
  }
  func.func @transform_2(%arg0: i32) -> (i32, i32) {
    %c0_i32 = arith.constant 0 : i32
    %c0_i32_0 = arith.constant 0 : i32
    %c0_i32_1 = arith.constant 0 : i32
    return %c0_i32, %c0_i32_0 : i32, i32
  }
  func.func @transform_3(%arg0: i32) -> (i32, i32) {
    %c0_i32 = arith.constant 0 : i32
    %c0_i32_0 = arith.constant 0 : i32
    %c0_i32_1 = arith.constant 0 : i32
    return %c0_i32, %c0_i32_0 : i32, i32
  }
  func.func @transform_4(%arg0: i32) -> (i32, i32) {
    %c0_i32 = arith.constant 0 : i32
    %c0_i32_0 = arith.constant 0 : i32
    %c0_i32_1 = arith.constant 0 : i32
    return %c0_i32, %c0_i32_0 : i32, i32
  }
  func.func @transform_5(%arg0: i32) -> (i32, i32) {
    %c0_i32 = arith.constant 0 : i32
    %c0_i32_0 = arith.constant 0 : i32
    %c0_i32_1 = arith.constant 0 : i32
    return %c0_i32, %c0_i32_0 : i32, i32
  }
  func.func @transform_6(%arg0: i32) -> (i32, i32) {
    %c0_i32 = arith.constant 0 : i32
    %c0_i32_0 = arith.constant 0 : i32
    %c0_i32_1 = arith.constant 0 : i32
    return %c0_i32, %c0_i32_0 : i32, i32
  }
  func.func @transform_7(%arg0: i32) -> (i32, i32) {
    %c0_i32 = arith.constant 0 : i32
    %c0_i32_0 = arith.constant 0 : i32
    return %arg0, %c0_i32 : i32, i32
  }
}

</mosaic_0001>

<bundles_post_ra>
// kernel: actor_forward.1
= control target key start
LH: loop header
LB: loop body
LE: loop exit
PB: predicated region body
PF: predicated region fallthrough
CT: control target
= control target key end

     0   :  { %s1400_s24 = smov 0   ;;  %s1673_s0 = inlined_call_operand.vmem [shape: f32[256,128], index: 0, kind: input, shape index: {}]   ;;  %s1674_s1 = inlined_call_operand.vmem [shape: f32[128,128], index: 1, kind: input, shape index: {}]   ;;  %s1675_s2 = inlined_call_operand.vmem [shape: f32[1,128], index: 2, kind: input, shape index: {}]   ;;  %s1676_s3 = inlined_call_operand.vmem [shape: f32[128,128], index: 3, kind: input, shape index: {}]   ;;  %s1677_s4 = inlined_call_operand.vmem [shape: f32[1,128], index: 4, kind: input, shape index: {}]   ;;  %s1678_s5 = inlined_call_operand.vmem [shape: f32[128,128], index: 5, kind: input, shape index: {}]   ;;  %s1679_s6 = inlined_call_operand.vmem [shape: f32[1,128], index: 6, kind: input, shape index: {}]   ;;  %s1680_s7 = inlined_call_operand.vmem [shape: f32[256,128], index: 7, kind: output, shape index: {}]  }
   0x1 LB: > { %s922_s25 = sadd.s32 4294967295, %s1358_s24   ;;  %p926_p0 = scmp.ge.s32.totalorder %s1358_s24, 1  ;;  %s1358_s24 = sphi %s1400_s24, %s17_s24  }
   0x2   : > { %p238_p1 = scmp.lt.s32.totalorder %s1358_s24, 3 }
   0x4   : > { %p239_p2 = pnand %p926_p0, %p238_p1 }
   0x5   : > { %v298_v0 = vld [vmem:[%s1674_s1] sm:$0xff] (!%p239_p2)  ;;  %v299_v1 = vld [vmem:[%s1674_s1 + $0x8] sm:$0xff] (!%p239_p2)  ;;  %v300_v2 = vld [vmem:[%s1674_s1 + $0x10] sm:$0xff] (!%p239_p2)  ;;  %s927_s9 = sshll.u32 (!%p239_p2), %s922_s25, 4 }
   0x6   : > { %242 = sbr.rel (%p239_p2) target bundleno = 731 (0x2db), region = 48  ;;  %v1200_v3 = vpack.c.bf16 (!%p239_p2), %v299_v1, %v298_v0  ;;  %v301_v4 = vld [vmem:[%s1674_s1 + $0x18] sm:$0xff] (!%p239_p2)  ;;  %p271_p3 = scmp.lt.s32.totalorder (!%p239_p2), %s927_s9, 31  ;;  %v302_v6 = vld [vmem:[%s1674_s1 + $0x20] sm:$0xff] (!%p239_p2)  ;;  %v303_v7 = vld [vmem:[%s1674_s1 + $0x28] sm:$0xff] (!%p239_p2) }
   0x7   : > { %v1204_v5 = vpack.c.bf16 (!%p239_p2), %v301_v4, %v300_v2  ;;  %v1208_v8 = vpack.c.bf16 (!%p239_p2), %v303_v7, %v302_v6  ;;  %v304_v9 = vld [vmem:[%s1674_s1 + $0x30] sm:$0xff] (!%p239_p2)  ;;  %v482_v10 = vld [vmem:[%s1676_s3] sm:$0xff] (!%p239_p2)  ;;  %v483_v11 = vld [vmem:[%s1676_s3 + $0x8] sm:$0xff] (!%p239_p2) }
   0x8   : > { %1201 = vmatprep.subr.bf16.mxu0 (!%p239_p2), %v1200_v3  ;;  %v305_v12 = vld [vmem:[%s1674_s1 + $0x38] sm:$0xff] (!%p239_p2)  ;;  %v1232_v13 = vpack.c.bf16 (!%p239_p2), %v483_v11, %v482_v10  ;;  %v484_v14 = vld [vmem:[%s1676_s3 + $0x10] sm:$0xff] (!%p239_p2)  ;;  %v306_v19 = vld [vmem:[%s1674_s1 + $0x40] sm:$0xff] (!%p239_p2) }
   0x9   : > { %1203 = vmatpush3.bf16.msra.mxu0 (!%p239_p2), %v1200_v3  ;;  %v485_v15 = vld [vmem:[%s1676_s3 + $0x18] sm:$0xff] (!%p239_p2)  ;;  %v1212_v18 = vpack.c.bf16 (!%p239_p2), %v305_v12, %v304_v9  ;;  %v307_v20 = vld [vmem:[%s1674_s1 + $0x48] sm:$0xff] (!%p239_p2)  ;;  %v486_v21 = vld [vmem:[%s1676_s3 + $0x20] sm:$0xff] (!%p239_p2) }
   0xa   : > { %1205 = vmatprep.subr.bf16.mxu0 (!%p239_p2), %v1204_v5  ;;  %v1236_v17 = vpack.c.bf16 (!%p239_p2), %v485_v15, %v484_v14  ;;  %1233 = vmatprep.subr.bf16.mxu1 (!%p239_p2), %v1232_v13  ;;  %v487_v22 = vld [vmem:[%s1676_s3 + $0x28] sm:$0xff] (!%p239_p2)  ;;  %v488_v23 = vld [vmem:[%s1676_s3 + $0x30] sm:$0xff] (!%p239_p2)  ;;  %v1216_v24 = vpack.c.bf16 (!%p239_p2), %v307_v20, %v306_v19  ;;  %v489_v26 = vld [vmem:[%s1676_s3 + $0x38] sm:$0xff] (!%p239_p2) }
   0xb   : > { %1235 = vmatpush3.bf16.msra.mxu1 (!%p239_p2), %v1232_v13  ;;  %v1240_v25 = vpack.c.bf16 (!%p239_p2), %v487_v22, %v486_v21  ;;  %v308_v27 = vld [vmem:[%s1674_s1 + $0x50] sm:$0xff] (!%p239_p2)  ;;  %v309_v28 = vld [vmem:[%s1674_s1 + $0x58] sm:$0xff] (!%p239_p2)  ;;  %v1244_v29 = vpack.c.bf16 (!%p239_p2), %v489_v26, %v488_v23  ;;  %v490_v30 = vld [vmem:[%s1676_s3 + $0x40] sm:$0xff] (!%p239_p2) }
   0xc   : > { %1237 = vmatprep.subr.bf16.mxu1 (!%p239_p2), %v1236_v17  ;;  %v491_v31 = vld [vmem:[%s1676_s3 + $0x48] sm:$0xff] (!%p239_p2)  ;;  %v1220_v32 = vpack.c.bf16 (!%p239_p2), %v309_v28, %v308_v27  ;;  %v310_v33 = vld [vmem:[%s1674_s1 + $0x60] sm:$0xff] (!%p239_p2)  ;;  %v492_v36 = vld [vmem:[%s1676_s3 + $0x50] sm:$0xff] (!%p239_p2) }
   0xd   : > { %s1682_s9 = smov (!%p271_p3, %s927_s9), 31  ;;  %1207 = vmatpush3.bf16.msra.mxu0 %v1204_v5  ;;  %v311_v34 = vld [vmem:[%s1674_s1 + $0x68] sm:$0xff]  ;;  %v1248_v35 = vpack.c.bf16 %v491_v31, %v490_v30  ;;  %v493_v37 = vld [vmem:[%s1676_s3 + $0x58] sm:$0xff]  ;;  %v312_v39 = vld [vmem:[%s1674_s1 + $0x70] sm:$0xff] }
   0xe   : > { %s928_s18 = sshll.u32 %s1682_s9, 3  ;;  %1209 = vmatprep.subr.bf16.mxu0 %v1208_v8  ;;  %v1224_v38 = vpack.c.bf16 %v311_v34, %v310_v33  ;;  %v313_v40 = vld [vmem:[%s1674_s1 + $0x78] sm:$0xff]  ;;  %v1252_v41 = vpack.c.bf16 %v493_v37, %v492_v36  ;;  %v494_v42 = vld [vmem:[%s1676_s3 + $0x60] sm:$0xff]  ;;  %v495_v43 = vld [vmem:[%s1676_s3 + $0x68] sm:$0xff] }
   0xf   : > { %s1446_s28 = scalar_lea.vmem %s1673_s0, %s928_s18  ;;  %1239 = vmatpush3.bf16.msra.mxu1 %v1236_v17  ;;  %v1228_v44 = vpack.c.bf16 %v313_v40, %v312_v39  ;;  %v1256_v45 = vpack.c.bf16 %v495_v43, %v494_v42  ;;  %v496_v61 = vld [vmem:[%s1676_s3 + $0x70] sm:$0xff]  ;;  %v497_v62 = vld [vmem:[%s1676_s3 + $0x78] sm:$0xff]  ;;  %v666_v0 = vld [vmem:[%s1678_s5] sm:$0xff]  ;;  %s1642_s13 = scalar_lea.vmem %s1680_s7, %s928_s18 }
  0x10   : > { %v282_v16 = vld [vmem:[%s1446_s28] sm:$0xff]  ;;  %1241 = vmatprep.subr.bf16.mxu1 %v1240_v25  ;;  %v283_v46 = vld [vmem:[%s1446_s28 + $0x8] sm:$0xff]  ;;  %v284_v47 = vld [vmem:[%s1446_s28 + $0x10] sm:$0xff]  ;;  %v1260_v63 = vpack.c.bf16 %v497_v62, %v496_v61 }
  0x11   : > { %1064 = vmatprep.mubr.f32.mxu0 %v282_v16  ;;  %1211 = vmatpush3.bf16.msra.mxu0 %v1208_v8  ;;  %v285_v48 = vld [vmem:[%s1446_s28 + $0x18] sm:$0xff]  ;;  %v286_v49 = vld [vmem:[%s1446_s28 + $0x20] sm:$0xff]  ;;  %v287_v50 = vld [vmem:[%s1446_s28 + $0x28] sm:$0xff] }
  0x12   : > { %1213 = vmatprep.subr.bf16.mxu0 %v1212_v18  ;;  %v288_v51 = vld [vmem:[%s1446_s28 + $0x30] sm:$0xff]  ;;  %v289_v52 = vld [vmem:[%s1446_s28 + $0x38] sm:$0xff]  ;;  %v290_v53 = vld [vmem:[%s1446_s28 + $0x40] sm:$0xff] }
  0x13   : > { %1243 = vmatpush3.bf16.msra.mxu1 %v1240_v25  ;;  %v291_v54 = vld [vmem:[%s1446_s28 + $0x48] sm:$0xff]  ;;  %v292_v55 = vld [vmem:[%s1446_s28 + $0x50] sm:$0xff]  ;;  %v293_v56 = vld [vmem:[%s1446_s28 + $0x58] sm:$0xff] }
  0x14   : > { %1245 = vmatprep.subr.bf16.mxu1 %v1244_v29  ;;  %v294_v57 = vld [vmem:[%s1446_s28 + $0x60] sm:$0xff]  ;;  %v295_v58 = vld [vmem:[%s1446_s28 + $0x68] sm:$0xff]  ;;  %v296_v59 = vld [vmem:[%s1446_s28 + $0x70] sm:$0xff] }
  0x15   : > { %1215 = vmatpush3.bf16.msra.mxu0 %v1212_v18  ;;  %v297_v60 = vld [vmem:[%s1446_s28 + $0x78] sm:$0xff]  ;;  %v667_v1 = vld [vmem:[%s1678_s5 + $0x8] sm:$0xff]  ;;  %v668_v2 = vld [vmem:[%s1678_s5 + $0x10] sm:$0xff] }
  0x16   : > { %1217 = vmatprep.subr.bf16.mxu0 %v1216_v24  ;;  %v1264_v3 = vpack.c.bf16 %v667_v1, %v666_v0  ;;  %v669_v4 = vld [vmem:[%s1678_s5 + $0x18] sm:$0xff]  ;;  %v670_v6 = vld [vmem:[%s1678_s5 + $0x20] sm:$0xff]  ;;  %v671_v7 = vld [vmem:[%s1678_s5 + $0x28] sm:$0xff] }
  0x17   : > { %1247 = vmatpush3.bf16.msra.mxu1 %v1244_v29  ;;  %v1268_v5 = vpack.c.bf16 %v669_v4, %v668_v2  ;;  %v1272_v8 = vpack.c.bf16 %v671_v7, %v670_v6  ;;  %v672_v9 = vld [vmem:[%s1678_s5 + $0x30] sm:$0xff]  ;;  %v673_v10 = vld [vmem:[%s1678_s5 + $0x38] sm:$0xff]  ;;  %v674_v12 = vld [vmem:[%s1678_s5 + $0x40] sm:$0xff] }
  0x18   : > { %1249 = vmatprep.subr.bf16.mxu1 %v1248_v35  ;;  %v1554_v11 = vpack.c.bf16 %v673_v10, %v672_v9  ;;  %v675_v13 = vld [vmem:[%s1678_s5 + $0x48] sm:$0xff]  ;;  %v676_v15 = vld [vmem:[%s1678_s5 + $0x50] sm:$0xff]  ;;  %v677_v16 = vld [vmem:[%s1678_s5 + $0x58] sm:$0xff] }
  0x19   : > { %1219 = vmatpush3.bf16.msra.mxu0 %v1216_v24  ;;  %v1563_v14 = vpack.c.bf16 %v675_v13, %v674_v12  ;;  %v1573_v17 = vpack.c.bf16 %v677_v16, %v676_v15  ;;  %v678_v18 = vld [vmem:[%s1678_s5 + $0x60] sm:$0xff]  ;;  %v679_v19 = vld [vmem:[%s1678_s5 + $0x68] sm:$0xff]  ;;  %v680_v6 = vld [vmem:[%s1678_s5 + $0x70] sm:$0xff] }
  0x1a   : > { %1221 = vmatprep.subr.bf16.mxu0 %v1220_v32  ;;  %v1583_v20 = vpack.c.bf16 %v679_v19, %v678_v18  ;;  %v1591_v21 = vld [vmem:[%s1675_s2] ss:$0 sm:$0xff]  ;;  %v681_v7 = vld [vmem:[%s1678_s5 + $0x78] sm:$0xff] }
  0x1b   : > { %1251 = vmatpush3.bf16.msra.mxu1 %v1248_v35  ;;  %v932_v9 = vld [vmem:[%s1677_s4] ss:$0 sm:$0xff] }
  0x1c   : > { %1253 = vmatprep.subr.bf16.mxu1 %v1252_v41 }
  0x1d   : > { %1223 = vmatpush3.bf16.msra.mxu0 %v1220_v32 }
  0x1e   : > { %1225 = vmatprep.subr.bf16.mxu0 %v1224_v38 }
  0x1f   : > { %1255 = vmatpush3.bf16.msra.mxu1 %v1252_v41 }
  0x20   : > { %1257 = vmatprep.subr.bf16.mxu1 %v1256_v45 }
  0x21   : > { %1227 = vmatpush3.bf16.msra.mxu0 %v1224_v38 }
  0x22   : > { %1229 = vmatprep.subr.bf16.mxu0 %v1228_v44 }
  0x23   : > { %1259 = vmatpush3.bf16.msra.mxu1 %v1256_v45 }
  0x24   : > { %1261 = vmatprep.subr.bf16.mxu1 %v1260_v63 }
  0x25   : > { %1231 = vmatpush3.bf16.msra.mxu0 %v1228_v44 }
  0x26   : > { %1265 = vmatprep.subr.bf16.mxu0 %v1264_v3 }
  0x27   : > { %1263 = vmatpush3.bf16.msra.mxu1 %v1260_v63 }
  0x28   : > { %1065 = vmatmul.mubr.f32.vlgmr.msra.gmra.mrb[0].mxu0 %v283_v46  ;;  %1296 = vmatprep.subr.bf16.mxu1 %v1264_v3 }
  0x29   : > { %1067 = vmatprep.mubr.f32.mxu0 %v284_v47  ;;  %1267 = vmatpush3.bf16.msra.mxu0 %v1264_v3 }
  0x2a   : > { %1269 = vmatprep.subr.bf16.mxu0 %v1268_v5 }
  0x2c   : > { %1068 = vmatmul.mubr.f32.gmra.mrb[2].mxu0 %v285_v48 }
  0x2d   : > { %1070 = vmatprep.mubr.f32.mxu0 %v286_v49  ;;  %1271 = vmatpush3.bf16.msra.mxu0 %v1268_v5 }
  0x2e   : > { %1273 = vmatprep.subr.bf16.mxu0 %v1272_v8 }
  0x30   : > { %1071 = vmatmul.mubr.f32.gmra.mrb[4].mxu0 %v287_v50 }
  0x31   : > { %1073 = vmatprep.mubr.f32.mxu0 %v288_v51  ;;  %1275 = vmatpush3.bf16.msra.mxu0 %v1272_v8 }
  0x32   : > { %1277 = vmatprep.subr.bf16.mxu0 %v1554_v11 }
  0x34   : > { %1074 = vmatmul.mubr.f32.gmra.mrb[6].mxu0 %v289_v52 }
  0x35   : > { %1076 = vmatprep.mubr.f32.mxu0 %v290_v53  ;;  %1279 = vmatpush3.bf16.msra.mxu0 %v1554_v11 }
  0x36   : > { %1281 = vmatprep.subr.bf16.mxu0 %v1563_v14 }
  0x38   : > { %1077 = vmatmul.mubr.f32.gmra.mrb[8].mxu0 %v291_v54 }
  0x39   : > { %1079 = vmatprep.mubr.f32.mxu0 %v292_v55  ;;  %1283 = vmatpush3.bf16.msra.mxu0 %v1563_v14 }
  0x3a   : > { %1285 = vmatprep.subr.bf16.mxu0 %v1573_v17 }
  0x3c   : > { %1080 = vmatmul.mubr.f32.gmra.mrb[10].mxu0 %v293_v56 }
  0x3d   : > { %1082 = vmatprep.mubr.f32.mxu0 %v294_v57  ;;  %1287 = vmatpush3.bf16.msra.mxu0 %v1573_v17 }
  0x3e   : > { %1289 = vmatprep.subr.bf16.mxu0 %v1583_v20 }
  0x40   : > { %1083 = vmatmul.mubr.f32.gmra.mrb[12].mxu0 %v295_v58 }
  0x41   : > { %1085 = vmatprep.mubr.f32.mxu0 %v296_v59  ;;  %1291 = vmatpush3.bf16.msra.mxu0 %v1583_v20 }
  0x44   : > { %1086 = vmatmul.mubr.f32.gmra.mrb[14].mxu0 %v297_v60 }
  0xfb   : > { %v1066_v22 = vpop.f32.mrb[0].mxu0 }
  0xfc   : > { %v393_v23 = vadd.f32 %v1066_v22, %v1591_v21  ;;  %v387_v24 = vpop.f32.mrb[1].mxu0 }
  0xfd   : > { %v388_v25 = vadd.f32 %v1591_v21, %v387_v24 }
  0xfe   : > { %v467_v28 = vmax.f32 %v393_v23, 0.0 }
  0xff   : > { %v1069_v26 = vpop.f32.mrb[2].mxu0  ;;  %v466_v27 = vmax.f32 %v388_v25, 0.0 }
 0x100   : > { %v403_v29 = vadd.f32 %v1069_v26, %v1591_v21  ;;  %v397_v30 = vpop.f32.mrb[3].mxu0 }
 0x101   : > { %v398_v31 = vadd.f32 %v1591_v21, %v397_v30  ;;  %1120 = vmatprep.mubr.f32.mxu1 %v466_v27 }
 0x102   : > { %1121 = vmatmul.mubr.f32.vlgmr.msra.gmra.mrb[0].mxu1 %v467_v28  ;;  %v469_v34 = vmax.f32 %v403_v29, 0.0 }
 0x103   : > { %v468_v32 = vmax.f32 %v398_v31, 0.0  ;;  %v1072_v33 = vpop.f32.mrb[4].mxu0  ;;  %1304 = vmatpush3.bf16.msra.mxu1 %v1264_v3 }
 0x104   : > { %v413_v35 = vadd.f32 %v1072_v33, %v1591_v21  ;;  %v407_v36 = vpop.f32.mrb[5].mxu0  ;;  %1297 = vmatprep.subr.bf16.mxu1 %v1268_v5 }
 0x105   : > { %v408_v37 = vadd.f32 %v1591_v21, %v407_v36  ;;  %1123 = vmatprep.mubr.f32.mxu1 %v468_v32 }
 0x106   : > { %1124 = vmatmul.mubr.f32.gmra.mrb[2].mxu1 %v469_v34  ;;  %v471_v40 = vmax.f32 %v413_v35, 0.0 }
 0x107   : > { %v470_v38 = vmax.f32 %v408_v37, 0.0  ;;  %v1075_v39 = vpop.f32.mrb[6].mxu0  ;;  %1305 = vmatpush3.bf16.msra.mxu1 %v1268_v5 }
 0x108   : > { %v423_v41 = vadd.f32 %v1075_v39, %v1591_v21  ;;  %v417_v42 = vpop.f32.mrb[7].mxu0  ;;  %1298 = vmatprep.subr.bf16.mxu1 %v1272_v8 }
 0x109   : > { %v418_v43 = vadd.f32 %v1591_v21, %v417_v42  ;;  %1126 = vmatprep.mubr.f32.mxu1 %v470_v38 }
 0x10a   : > { %1127 = vmatmul.mubr.f32.gmra.mrb[4].mxu1 %v471_v40  ;;  %v473_v46 = vmax.f32 %v423_v41, 0.0 }
 0x10b   : > { %v472_v44 = vmax.f32 %v418_v43, 0.0  ;;  %v1078_v45 = vpop.f32.mrb[8].mxu0  ;;  %1306 = vmatpush3.bf16.msra.mxu1 %v1272_v8  ;;  %v1292_v8 = vpack.c.bf16 %v681_v7, %v680_v6 }
 0x10c   : > { %v433_v47 = vadd.f32 %v1078_v45, %v1591_v21  ;;  %v427_v48 = vpop.f32.mrb[9].mxu0  ;;  %1299 = vmatprep.subr.bf16.mxu1 %v1554_v11 }
 0x10d   : > { %v428_v49 = vadd.f32 %v1591_v21, %v427_v48  ;;  %1129 = vmatprep.mubr.f32.mxu1 %v472_v44  ;;  %1293 = vmatprep.subr.bf16.mxu0 %v1292_v8 }
 0x10e   : > { %1130 = vmatmul.mubr.f32.gmra.mrb[6].mxu1 %v473_v46  ;;  %v475_v52 = vmax.f32 %v433_v47, 0.0  ;;  %1295 = vmatpush3.bf16.msra.mxu0 %v1292_v8 }
 0x10f   : > { %v474_v50 = vmax.f32 %v428_v49, 0.0  ;;  %v1081_v51 = vpop.f32.mrb[10].mxu0  ;;  %1307 = vmatpush3.bf16.msra.mxu1 %v1554_v11 }
 0x110   : > { %v443_v53 = vadd.f32 %v1081_v51, %v1591_v21  ;;  %v437_v54 = vpop.f32.mrb[11].mxu0  ;;  %1300 = vmatprep.subr.bf16.mxu1 %v1563_v14 }
 0x111   : > { %v438_v55 = vadd.f32 %v1591_v21, %v437_v54  ;;  %1132 = vmatprep.mubr.f32.mxu1 %v474_v50 }
 0x112   : > { %1133 = vmatmul.mubr.f32.gmra.mrb[8].mxu1 %v475_v52  ;;  %v477_v58 = vmax.f32 %v443_v53, 0.0 }
 0x113   : > { %v476_v56 = vmax.f32 %v438_v55, 0.0  ;;  %v1084_v57 = vpop.f32.mrb[12].mxu0  ;;  %1308 = vmatpush3.bf16.msra.mxu1 %v1563_v14 }
 0x114   : > { %v453_v59 = vadd.f32 %v1084_v57, %v1591_v21  ;;  %v447_v60 = vpop.f32.mrb[13].mxu0  ;;  %1301 = vmatprep.subr.bf16.mxu1 %v1573_v17 }
 0x115   : > { %v448_v61 = vadd.f32 %v1591_v21, %v447_v60  ;;  %1135 = vmatprep.mubr.f32.mxu1 %v476_v56 }
 0x116   : > { %1136 = vmatmul.mubr.f32.gmra.mrb[10].mxu1 %v477_v58  ;;  %v479_v0 = vmax.f32 %v453_v59, 0.0  ;;  %v1629_v58 = vld [vmem:[%s1679_s6] ss:$0 sm:$0xff] }
 0x117   : > { %v478_v62 = vmax.f32 %v448_v61, 0.0  ;;  %v1087_v63 = vpop.f32.mrb[14].mxu0  ;;  %1309 = vmatpush3.bf16.msra.mxu1 %v1573_v17 }
 0x118   : > { %v463_v1 = vadd.f32 %v1087_v63, %v1591_v21  ;;  %v457_v2 = vpop.f32.mrb[15].mxu0  ;;  %1302 = vmatprep.subr.bf16.mxu1 %v1583_v20 }
 0x119   : > { %v458_v3 = vadd.f32 %v1591_v21, %v457_v2  ;;  %1138 = vmatprep.mubr.f32.mxu1 %v478_v62 }
 0x11a   : > { %1139 = vmatmul.mubr.f32.gmra.mrb[12].mxu1 %v479_v0  ;;  %v481_v5 = vmax.f32 %v463_v1, 0.0 }
 0x11b   : > { %v480_v4 = vmax.f32 %v458_v3, 0.0  ;;  %1310 = vmatpush3.bf16.msra.mxu1 %v1583_v20 }
 0x11c   : > { %1303 = vmatprep.subr.bf16.mxu1 %v1292_v8 }
 0x11d   : > { %1141 = vmatprep.mubr.f32.mxu1 %v480_v4 }
 0x11e   : > { %1142 = vmatmul.mubr.f32.gmra.mrb[14].mxu1 %v481_v5 }
 0x11f   : > { %1311 = vmatpush3.bf16.msra.mxu1 %v1292_v8 }
 0x1d5   : > { %v1122_v10 = vpop.f32.mrb[0].mxu1 }
 0x1d6   : > { %v577_v11 = vadd.f32 %v1122_v10, %v932_v9  ;;  %v571_v12 = vpop.f32.mrb[1].mxu1 }
 0x1d7   : > { %v572_v13 = vadd.f32 %v932_v9, %v571_v12 }
 0x1d8   : > { %v651_v16 = vmax.f32 %v577_v11, 0.0 }
 0x1d9   : > { %v650_v14 = vmax.f32 %v572_v13, 0.0  ;;  %v1125_v15 = vpop.f32.mrb[2].mxu1 }
 0x1da   : > { %v587_v17 = vadd.f32 %v1125_v15, %v932_v9  ;;  %v581_v18 = vpop.f32.mrb[3].mxu1 }
 0x1db   : > { %v582_v19 = vadd.f32 %v932_v9, %v581_v18  ;;  %1176 = vmatprep.mubr.f32.mxu0 %v650_v14 }
 0x1dc   : > { %1177 = vmatmul.mubr.f32.vlgmr.msra.gmra.mrb[16].mxu0 %v651_v16  ;;  %v653_v22 = vmax.f32 %v587_v17, 0.0 }
 0x1dd   : > { %v652_v20 = vmax.f32 %v582_v19, 0.0  ;;  %v1128_v21 = vpop.f32.mrb[4].mxu1 }
 0x1de   : > { %v597_v23 = vadd.f32 %v1128_v21, %v932_v9  ;;  %v591_v24 = vpop.f32.mrb[5].mxu1 }
 0x1df   : > { %v592_v25 = vadd.f32 %v932_v9, %v591_v24  ;;  %1179 = vmatprep.mubr.f32.mxu0 %v652_v20 }
 0x1e0   : > { %1180 = vmatmul.mubr.f32.gmra.mrb[18].mxu0 %v653_v22  ;;  %v655_v28 = vmax.f32 %v597_v23, 0.0 }
 0x1e1   : > { %v654_v26 = vmax.f32 %v592_v25, 0.0  ;;  %v1131_v27 = vpop.f32.mrb[6].mxu1 }
 0x1e2   : > { %v607_v29 = vadd.f32 %v1131_v27, %v932_v9  ;;  %v601_v30 = vpop.f32.mrb[7].mxu1 }
 0x1e3   : > { %v602_v31 = vadd.f32 %v932_v9, %v601_v30  ;;  %1182 = vmatprep.mubr.f32.mxu0 %v654_v26 }
 0x1e4   : > { %1183 = vmatmul.mubr.f32.gmra.mrb[20].mxu0 %v655_v28  ;;  %v657_v34 = vmax.f32 %v607_v29, 0.0 }
 0x1e5   : > { %v656_v32 = vmax.f32 %v602_v31, 0.0  ;;  %v1134_v33 = vpop.f32.mrb[8].mxu1 }
 0x1e6   : > { %v617_v35 = vadd.f32 %v1134_v33, %v932_v9  ;;  %v611_v36 = vpop.f32.mrb[9].mxu1 }
 0x1e7   : > { %v612_v37 = vadd.f32 %v932_v9, %v611_v36  ;;  %1185 = vmatprep.mubr.f32.mxu0 %v656_v32 }
 0x1e8   : > { %1186 = vmatmul.mubr.f32.gmra.mrb[22].mxu0 %v657_v34  ;;  %v659_v40 = vmax.f32 %v617_v35, 0.0 }
 0x1e9   : > { %v658_v38 = vmax.f32 %v612_v37, 0.0  ;;  %v1137_v39 = vpop.f32.mrb[10].mxu1 }
 0x1ea   : > { %v627_v41 = vadd.f32 %v1137_v39, %v932_v9  ;;  %v621_v42 = vpop.f32.mrb[11].mxu1 }
 0x1eb   : > { %v622_v43 = vadd.f32 %v932_v9, %v621_v42  ;;  %1188 = vmatprep.mubr.f32.mxu1 %v658_v38 }
 0x1ec   : > { %1189 = vmatmul.mubr.f32.vlgmr.msra.gmra.mrb[16].mxu1 %v659_v40  ;;  %v661_v46 = vmax.f32 %v627_v41, 0.0 }
 0x1ed   : > { %v660_v44 = vmax.f32 %v622_v43, 0.0  ;;  %v1140_v45 = vpop.f32.mrb[12].mxu1 }
 0x1ee   : > { %v637_v47 = vadd.f32 %v1140_v45, %v932_v9  ;;  %v631_v48 = vpop.f32.mrb[13].mxu1 }
 0x1ef   : > { %v632_v49 = vadd.f32 %v932_v9, %v631_v48  ;;  %1191 = vmatprep.mubr.f32.mxu1 %v660_v44 }
 0x1f0   : > { %1192 = vmatmul.mubr.f32.gmra.mrb[18].mxu1 %v661_v46  ;;  %v663_v52 = vmax.f32 %v637_v47, 0.0 }
 0x1f1   : > { %v662_v50 = vmax.f32 %v632_v49, 0.0  ;;  %v1143_v51 = vpop.f32.mrb[14].mxu1 }
 0x1f2   : > { %v647_v53 = vadd.f32 %v1143_v51, %v932_v9  ;;  %v641_v54 = vpop.f32.mrb[15].mxu1 }
 0x1f3   : > { %v642_v55 = vadd.f32 %v932_v9, %v641_v54  ;;  %1194 = vmatprep.mubr.f32.mxu1 %v662_v50 }
 0x1f4   : > { %1195 = vmatmul.mubr.f32.gmra.mrb[20].mxu1 %v663_v52  ;;  %v665_v57 = vmax.f32 %v647_v53, 0.0 }
 0x1f5   : > { %v664_v56 = vmax.f32 %v642_v55, 0.0 }
 0x1f7   : > { %1197 = vmatprep.mubr.f32.mxu1 %v664_v56 }
 0x1f8   : > { %1198 = vmatmul.mubr.f32.gmra.mrb[22].mxu1 %v665_v57 }
 0x2af   : > { %v1178_v59 = vpop.f32.mrb[16].mxu0 }
 0x2b0   : > { %v761_v60 = vadd.f32 %v1178_v59, %v1629_v58  ;;  %v755_v61 = vpop.f32.mrb[17].mxu0 }
 0x2b1   : > { %v756_v62 = vadd.f32 %v1629_v58, %v755_v61 }
 0x2b2   : > { %1320 = vtanh.f32 %v761_v60 }
 0x2b3   : > { %1322 = vtanh.f32 %v756_v62  ;;  %v1181_v63 = vpop.f32.mrb[18].mxu0 }
 0x2b4   : > { %v771_v0 = vadd.f32 %v1181_v63, %v1629_v58  ;;  %v765_v1 = vpop.f32.mrb[19].mxu0 }
 0x2b5   : > { %v766_v2 = vadd.f32 %v1629_v58, %v765_v1 }
 0x2b6   : > { %1324 = vtanh.f32 %v771_v0 }
 0x2b7   : > { %1326 = vtanh.f32 %v766_v2  ;;  %v1184_v3 = vpop.f32.mrb[20].mxu0 }
 0x2b8   : > { %v781_v4 = vadd.f32 %v1184_v3, %v1629_v58  ;;  %v775_v5 = vpop.f32.mrb[21].mxu0 }
 0x2b9   : > { %v776_v6 = vadd.f32 %v1629_v58, %v775_v5 }
 0x2ba   : > { %1328 = vtanh.f32 %v781_v4 }
 0x2bb   : > { %1330 = vtanh.f32 %v776_v6  ;;  %v1187_v7 = vpop.f32.mrb[22].mxu0 }
 0x2bc   : > { %v1321_v8 = vpop.eup %1320  ;;  %v791_v9 = vadd.f32 %v1187_v7, %v1629_v58  ;;  %v785_v10 = vpop.f32.mrb[23].mxu0 }
 0x2bd   : > { %v1323_v11 = vpop.eup %1322  ;;  %851 = vst [vmem:[%s1642_s13 + $0x8] sm:$0xff] %v1321_v8  ;;  %v786_v12 = vadd.f32 %v1629_v58, %v785_v10 }
 0x2be   : > { %850 = vst [vmem:[%s1642_s13] sm:$0xff] %v1323_v11  ;;  %1332 = vtanh.f32 %v791_v9 }
 0x2bf   : > { %1334 = vtanh.f32 %v786_v12  ;;  %v1190_v13 = vpop.f32.mrb[16].mxu1 }
 0x2c0   : > { %v1325_v14 = vpop.eup %1324  ;;  %v801_v15 = vadd.f32 %v1190_v13, %v1629_v58  ;;  %v795_v16 = vpop.f32.mrb[17].mxu1 }
 0x2c1   : > { %v1327_v17 = vpop.eup %1326  ;;  %853 = vst [vmem:[%s1642_s13 + $0x18] sm:$0xff] %v1325_v14  ;;  %v796_v18 = vadd.f32 %v1629_v58, %v795_v16 }
 0x2c2   : > { %852 = vst [vmem:[%s1642_s13 + $0x10] sm:$0xff] %v1327_v17  ;;  %1336 = vtanh.f32 %v801_v15 }
 0x2c3   : > { %1338 = vtanh.f32 %v796_v18  ;;  %v1193_v19 = vpop.f32.mrb[18].mxu1 }
 0x2c4   : > { %v1329_v20 = vpop.eup %1328  ;;  %v811_v21 = vadd.f32 %v1193_v19, %v1629_v58  ;;  %v805_v22 = vpop.f32.mrb[19].mxu1 }
 0x2c5   : > { %v1331_v23 = vpop.eup %1330  ;;  %855 = vst [vmem:[%s1642_s13 + $0x28] sm:$0xff] %v1329_v20  ;;  %v806_v24 = vadd.f32 %v1629_v58, %v805_v22 }
 0x2c6   : > { %854 = vst [vmem:[%s1642_s13 + $0x20] sm:$0xff] %v1331_v23  ;;  %1340 = vtanh.f32 %v811_v21 }
 0x2c7   : > { %1342 = vtanh.f32 %v806_v24  ;;  %v1196_v25 = vpop.f32.mrb[20].mxu1 }
 0x2c8   : > { %v1333_v26 = vpop.eup %1332  ;;  %v821_v27 = vadd.f32 %v1196_v25, %v1629_v58  ;;  %v815_v28 = vpop.f32.mrb[21].mxu1 }
 0x2c9   : > { %v1335_v29 = vpop.eup %1334  ;;  %857 = vst [vmem:[%s1642_s13 + $0x38] sm:$0xff] %v1333_v26  ;;  %v816_v30 = vadd.f32 %v1629_v58, %v815_v28 }
 0x2ca   : > { %856 = vst [vmem:[%s1642_s13 + $0x30] sm:$0xff] %v1335_v29  ;;  %1344 = vtanh.f32 %v821_v27 }
 0x2cb   : > { %1346 = vtanh.f32 %v816_v30  ;;  %v1199_v31 = vpop.f32.mrb[22].mxu1 }
 0x2cc   : > { %v1337_v32 = vpop.eup %1336  ;;  %v831_v33 = vadd.f32 %v1199_v31, %v1629_v58  ;;  %v825_v34 = vpop.f32.mrb[23].mxu1 }
 0x2cd   : > { %v1339_v35 = vpop.eup %1338  ;;  %859 = vst [vmem:[%s1642_s13 + $0x48] sm:$0xff] %v1337_v32  ;;  %v826_v36 = vadd.f32 %v1629_v58, %v825_v34 }
 0x2ce   : > { %858 = vst [vmem:[%s1642_s13 + $0x40] sm:$0xff] %v1339_v35  ;;  %1348 = vtanh.f32 %v831_v33 }
 0x2cf   : > { %1350 = vtanh.f32 %v826_v36 }
 0x2d0   : > { %v1341_v37 = vpop.eup %1340 }
 0x2d1   : > { %v1343_v38 = vpop.eup %1342  ;;  %861 = vst [vmem:[%s1642_s13 + $0x58] sm:$0xff] %v1341_v37 }
 0x2d2   : > { %860 = vst [vmem:[%s1642_s13 + $0x50] sm:$0xff] %v1343_v38 }
 0x2d4   : > { %v1345_v39 = vpop.eup %1344 }
 0x2d5   : > { %v1347_v40 = vpop.eup %1346  ;;  %863 = vst [vmem:[%s1642_s13 + $0x68] sm:$0xff] %v1345_v39 }
 0x2d6   : > { %862 = vst [vmem:[%s1642_s13 + $0x60] sm:$0xff] %v1347_v40 }
 0x2d8   : > { %v1349_v41 = vpop.eup %1348 }
 0x2d9   : > { %v1351_v42 = vpop.eup %1350  ;;  %865 = vst [vmem:[%s1642_s13 + $0x78] sm:$0xff] %v1349_v41 }
 0x2da   : > { %864 = vst [vmem:[%s1642_s13 + $0x70] sm:$0xff] %v1351_v42 }
 0x2db PF: > { %s17_s24 = sadd.s32 1, %s1358_s24  }
 0x2dc   : > { %p14_p4 = scmp.ge.s32.totalorder %s17_s24, 4  }
 0x2de   :  { %16 = sbr.rel (!%p14_p4) target bundleno = 1 (0x1), region = 78 }

</bundles_post_ra>
